<compile_context>
chip_gen: v6e
topology: v6e:2x2x1
jax: 0.10.0
libtpu: 0.0.40
codegen_flags: <defaults>
</compile_context>

<pallas_src>
import jax
import jax.numpy as jnp
from jax.experimental import pallas as pl
from jax.experimental.pallas import tpu as pltpu


# ----------------------------------------------------------------------------
# Fused kernel: preference-mean (as a matmul) + 2-layer feature extractor +
# all Q-heads. Activations are (TB, features) with features on the lane axis.
# Weights arrive in bf16; accumulation and bias/ReLU stay in f32.
# ----------------------------------------------------------------------------
def fused_agent_kernel(state_ref, pref_ref,
                       fe_w1s_ref, fe_w1p_ref, fe_b1_ref,
                       fe_w2_ref, fe_b2_ref,
                       hd_w1_ref, hd_b1_ref,
                       hd_w2_ref, hd_b2_ref,
                       q_ref):
    state = state_ref[...].astype(jnp.bfloat16)                  # (TB, S)
    pref = pref_ref[...].astype(jnp.bfloat16)                    # (TB, n_obj)

    # Feature extractor layer 1.  The preference-mean + concat of the original
    # module is exactly state @ W1[:S] + pref @ ((1/n_obj) * 1 1^T W1[S:]).
    h1 = (jnp.dot(state, fe_w1s_ref[...], preferred_element_type=jnp.float32)
          + jnp.dot(pref, fe_w1p_ref[...], preferred_element_type=jnp.float32)
          + fe_b1_ref[...])
    h1 = jnp.maximum(h1, 0.0)                                    # ReLU, f32

    # Feature extractor layer 2.
    h2 = jnp.dot(h1.astype(jnp.bfloat16), fe_w2_ref[...],
                 preferred_element_type=jnp.float32) + fe_b2_ref[...]
    h2 = jnp.maximum(h2, 0.0)                                    # (TB, hidden)

    # All heads, layer 1: lane-concatenated weights (hidden, n_heads*hidden).
    hh = jnp.dot(h2.astype(jnp.bfloat16), hd_w1_ref[...],
                 preferred_element_type=jnp.float32) + hd_b1_ref[...]
    hh = jnp.maximum(hh, 0.0)                                    # (TB, n_heads*hidden)

    # All heads, layer 2: block-diagonal (n_heads*hidden, n_heads*n_actions).
    q = jnp.dot(hh.astype(jnp.bfloat16), hd_w2_ref[...],
                preferred_element_type=jnp.float32) + hd_b2_ref[...]
    q_ref[...] = q.astype(q_ref.dtype)                           # (TB, n_heads*n_actions)


# ----------------------------------------------------------------------------
# Parameter packing: done once, outside the per-step forward.
# ----------------------------------------------------------------------------
def pack_params(params, n_learning_obj):
    """Re-layout per-head params for the fused, lane-wide, bf16-weight kernel."""
    n_heads, hidden, _ = params["hd_w1"].shape
    n_actions = params["hd_w2"].shape[-1]
    state_shape = params["fe_w1"].shape[0] - 1          # 'mean' adds one input row

    wdt = jnp.bfloat16                                   # matmul-operand dtype

    # Split fe_w1 into state rows and the single preference-feature row, and
    # fold the 'mean' reduction into the preference weight (exact, linear).
    fe_w1s = params["fe_w1"][:state_shape]               # (state_shape, hidden)
    mean_op = jnp.ones((n_learning_obj, 1), jnp.float32) / n_learning_obj
    fe_w1p = mean_op @ params["fe_w1"][state_shape:]     # (n_obj, hidden)

    # Heads layer 1: concatenate along the output (lane) axis.
    hd_w1 = jnp.concatenate([params["hd_w1"][o] for o in range(n_heads)], axis=1)
    hd_b1 = jnp.concatenate([params["hd_b1"][o] for o in range(n_heads)], axis=1)

    # Heads layer 2: block-diagonal so one matmul computes every head.
    hd_w2 = jnp.zeros((n_heads * hidden, n_heads * n_actions), jnp.float32)
    for o in range(n_heads):
        hd_w2 = hd_w2.at[o * hidden:(o + 1) * hidden,
                         o * n_actions:(o + 1) * n_actions].set(params["hd_w2"][o])
    hd_b2 = jnp.concatenate([params["hd_b2"][o] for o in range(n_heads)], axis=1)

    return {
        # bf16 matmul operands
        "fe_w1s": fe_w1s.astype(wdt), "fe_w1p": fe_w1p.astype(wdt),
        "fe_w2": params["fe_w2"].astype(wdt),
        "hd_w1": hd_w1.astype(wdt), "hd_w2": hd_w2.astype(wdt),
        # f32 biases (bias-add/ReLU path stays f32; v5e has no bf16 VPU)
        "fe_b1": params["fe_b1"], "fe_b2": params["fe_b2"],
        "hd_b1": hd_b1, "hd_b2": hd_b2,
    }


# ----------------------------------------------------------------------------
# Python wrapper
# ----------------------------------------------------------------------------
def multi_head_agent_forward(state, preference, packed, n_heads, *, max_tb=512):
    """state: (bs, state_shape) f32, preference: (bs, n_learning_obj) f32."""
    bs, state_shape = state.shape
    n_obj = preference.shape[-1]
    out_cols = packed["hd_b2"].shape[-1]                # n_heads * n_actions
    n_actions = out_cols // n_heads

    # Batch tile: full batch when small, 512-row tiles (>=85% of HBM roofline
    # per measured data) when large.  Sized well under v7x's 64 MiB VMEM.
    tb = bs if bs <= max_tb else max_tb
    grid = (pl.cdiv(bs, tb),)

    def batch_spec(cols):
        return pl.BlockSpec((tb, cols), lambda i: (i, 0))

    def weight_spec(arr):
        # Same block every grid step -> weights stay VMEM-resident (no re-DMA).
        return pl.BlockSpec(arr.shape, lambda i: (0, 0))

    weights = (packed["fe_w1s"], packed["fe_w1p"], packed["fe_b1"],
               packed["fe_w2"], packed["fe_b2"],
               packed["hd_w1"], packed["hd_b1"],
               packed["hd_w2"], packed["hd_b2"])

    q_flat = pl.pallas_call(
        fused_agent_kernel,
        out_shape=jax.ShapeDtypeStruct((bs, out_cols), jnp.float32),
        grid=grid,
        in_specs=[batch_spec(state_shape), batch_spec(n_obj)]
                 + [weight_spec(w) for w in weights],
        out_specs=batch_spec(out_cols),
        compiler_params=pltpu.CompilerParams(
            # Batch axis is embarrassingly parallel -> shard across v7x's 2 TCs.
            dimension_semantics=("parallel",),
        ),
    )(state, preference, *weights)

    # Free reshape (columns are already ordered head-major), matches
    # torch.cat([head_o(h).unsqueeze(1) for o in forward_obj], dim=1).
    return q_flat.reshape(bs, n_heads, n_actions)


# ----------------------------------------------------------------------------
# Pure-JAX reference (for correctness check) — original per-head f32 layout.
# ----------------------------------------------------------------------------
def reference_forward(state, preference, params, n_heads):
    pref_feat = jnp.mean(preference, axis=-1, keepdims=True)
    x = jnp.concatenate([state, pref_feat], axis=-1)
    h = jnp.maximum(x @ params["fe_w1"] + params["fe_b1"], 0.0)
    h = jnp.maximum(h @ params["fe_w2"] + params["fe_b2"], 0.0)
    qs = []
    for o in range(n_heads):
        hh = jnp.maximum(h @ params["hd_w1"][o] + params["hd_b1"][o], 0.0)
        qs.append((hh @ params["hd_w2"][o] + params["hd_b2"][o])[:, None, :])
    return jnp.concatenate(qs, axis=1)


def init_params(key, state_shape, hidden, n_actions, n_heads):
    in_dim = state_shape + 1  # 'mean' preference handling adds one feature
    ks = jax.random.split(key, 8)

    def lin(k, fan_in, shape):
        bound = 1.0 / jnp.sqrt(fan_in)  # mimic torch.nn.Linear default init
        return jax.random.uniform(k, shape, jnp.float32, -bound, bound)

    return {
        "fe_w1": lin(ks[0], in_dim, (in_dim, hidden)),
        "fe_b1": lin(ks[1], in_dim, (1, hidden)),
        "fe_w2": lin(ks[2], hidden, (hidden, hidden)),
        "fe_b2": lin(ks[3], hidden, (1, hidden)),
        "hd_w1": lin(ks[4], hidden, (n_heads, hidden, hidden)),
        "hd_b1": lin(ks[5], hidden, (n_heads, 1, hidden)),
        "hd_w2": lin(ks[6], hidden, (n_heads, hidden, n_actions)),
        "hd_b2": lin(ks[7], hidden, (n_heads, 1, n_actions)),
    }


if __name__ == "__main__":
    # Small, module-consistent shapes.
    bs = 8
    state_shape = 16
    n_learning_obj = 4
    hidden_dim = 32
    n_actions = 8
    n_heads = 3            # forward_obj = [0, 1, 2]

    key = jax.random.PRNGKey(0)
    k_state, k_pref, k_params = jax.random.split(key, 3)
    state = jax.random.normal(k_state, (bs, state_shape), jnp.float32)
    preference = jax.random.uniform(k_pref, (bs, n_learning_obj), jnp.float32)
    params = init_params(k_params, state_shape, hidden_dim, n_actions, n_heads)

    packed = pack_params(params, n_learning_obj)       # one-time re-layout (bf16)
    q = multi_head_agent_forward(state, preference, packed, n_heads)
    q = jax.block_until_ready(q)

    q_ref = reference_forward(state, preference, params, n_heads)
    assert q.shape == (bs, n_heads, n_actions), q.shape
    # bf16 matmul operands with f32 accumulation -> small, bounded deviation
    # from the f32 reference.
    assert jnp.allclose(q, q_ref, atol=5e-2, rtol=5e-2), (
        "mismatch vs reference, max abs err = "
        f"{float(jnp.max(jnp.abs(q - q_ref)))}")

    print("KERNEL_OK")
</pallas_src>

<mosaic_0001>
module attributes {stable_mosaic.version = 11 : i64} {
  func.func @fused_agent_kernel(%arg0: i32, %arg1: memref<8x16xf32, #tpu.memory_space<vmem>>, %arg2: memref<8x4xf32, #tpu.memory_space<vmem>>, %arg3: memref<16x32xbf16, #tpu.memory_space<vmem>>, %arg4: memref<4x32xbf16, #tpu.memory_space<vmem>>, %arg5: memref<1x32xf32, #tpu.memory_space<vmem>>, %arg6: memref<32x32xbf16, #tpu.memory_space<vmem>>, %arg7: memref<1x32xf32, #tpu.memory_space<vmem>>, %arg8: memref<32x96xbf16, #tpu.memory_space<vmem>>, %arg9: memref<1x96xf32, #tpu.memory_space<vmem>>, %arg10: memref<96x24xbf16, #tpu.memory_space<vmem>>, %arg11: memref<1x24xf32, #tpu.memory_space<vmem>>, %arg12: memref<8x24xf32, #tpu.memory_space<vmem>>) attributes {dimension_semantics = [#tpu.dimension_semantics<parallel>], iteration_bounds = array<i64: 1>, scalar_prefetch = 0 : i64, scratch_operands = 0 : i64, tpu.core_type = #tpu.core_type<tc>, window_params = [{transform_indices = @transform_0, window_bounds = array<i64: 8, 16>}, {transform_indices = @transform_1, window_bounds = array<i64: 8, 4>}, {pipeline_mode = #tpu.pipeline_mode<synchronous>, transform_indices = @transform_2, window_bounds = array<i64: 16, 32>}, {pipeline_mode = #tpu.pipeline_mode<synchronous>, transform_indices = @transform_3, window_bounds = array<i64: 4, 32>}, {pipeline_mode = #tpu.pipeline_mode<synchronous>, transform_indices = @transform_4, window_bounds = array<i64: 1, 32>}, {pipeline_mode = #tpu.pipeline_mode<synchronous>, transform_indices = @transform_5, window_bounds = array<i64: 32, 32>}, {pipeline_mode = #tpu.pipeline_mode<synchronous>, transform_indices = @transform_6, window_bounds = array<i64: 1, 32>}, {pipeline_mode = #tpu.pipeline_mode<synchronous>, transform_indices = @transform_7, window_bounds = array<i64: 32, 96>}, {pipeline_mode = #tpu.pipeline_mode<synchronous>, transform_indices = @transform_8, window_bounds = array<i64: 1, 96>}, {pipeline_mode = #tpu.pipeline_mode<synchronous>, transform_indices = @transform_9, window_bounds = array<i64: 96, 24>}, {pipeline_mode = #tpu.pipeline_mode<synchronous>, transform_indices = @transform_10, window_bounds = array<i64: 1, 24>}, {transform_indices = @transform_11, window_bounds = array<i64: 8, 24>}]} {
    %c0 = arith.constant 0 : index
    %c0_0 = arith.constant 0 : index
    %0 = vector.load %arg1[%c0, %c0_0] : memref<8x16xf32, #tpu.memory_space<vmem>>, vector<8x16xf32>
    %1 = arith.truncf %0 : vector<8x16xf32> to vector<8x16xbf16>
    %c0_1 = arith.constant 0 : index
    %c0_2 = arith.constant 0 : index
    %2 = vector.load %arg2[%c0_1, %c0_2] : memref<8x4xf32, #tpu.memory_space<vmem>>, vector<8x4xf32>
    %3 = arith.truncf %2 : vector<8x4xf32> to vector<8x4xbf16>
    %c0_3 = arith.constant 0 : index
    %c0_4 = arith.constant 0 : index
    %4 = vector.load %arg3[%c0_3, %c0_4] : memref<16x32xbf16, #tpu.memory_space<vmem>>, vector<16x32xbf16>
    %cst = arith.constant dense<0.000000e+00> : vector<8x32xf32>
    %5 = tpu.matmul %1, %4, %cst {dimension_numbers = #tpu.dot_dimension_numbers<[1], [0], [0], [1], [0, 0, 1, 1], [], []>} : vector<8x16xbf16>, vector<16x32xbf16>, vector<8x32xf32> -> vector<8x32xf32>
    %c0_5 = arith.constant 0 : index
    %c0_6 = arith.constant 0 : index
    %6 = vector.load %arg4[%c0_5, %c0_6] : memref<4x32xbf16, #tpu.memory_space<vmem>>, vector<4x32xbf16>
    %cst_7 = arith.constant dense<0.000000e+00> : vector<8x32xf32>
    %7 = tpu.matmul %3, %6, %cst_7 {dimension_numbers = #tpu.dot_dimension_numbers<[1], [0], [0], [1], [0, 0, 1, 1], [], []>} : vector<8x4xbf16>, vector<4x32xbf16>, vector<8x32xf32> -> vector<8x32xf32>
    %8 = arith.addf %5, %7 : vector<8x32xf32>
    %c0_8 = arith.constant 0 : index
    %c0_9 = arith.constant 0 : index
    %9 = vector.load %arg5[%c0_8, %c0_9] : memref<1x32xf32, #tpu.memory_space<vmem>>, vector<1x32xf32>
    %10 = vector.broadcast %9 : vector<1x32xf32> to vector<8x32xf32>
    %11 = arith.addf %8, %10 : vector<8x32xf32>
    %cst_10 = arith.constant 0.000000e+00 : f32
    %12 = vector.broadcast %cst_10 : f32 to vector<8x32xf32>
    %13 = arith.maximumf %11, %12 : vector<8x32xf32>
    %14 = arith.truncf %13 : vector<8x32xf32> to vector<8x32xbf16>
    %c0_11 = arith.constant 0 : index
    %c0_12 = arith.constant 0 : index
    %15 = vector.load %arg6[%c0_11, %c0_12] : memref<32x32xbf16, #tpu.memory_space<vmem>>, vector<32x32xbf16>
    %cst_13 = arith.constant dense<0.000000e+00> : vector<8x32xf32>
    %16 = tpu.matmul %14, %15, %cst_13 {dimension_numbers = #tpu.dot_dimension_numbers<[1], [0], [0], [1], [0, 0, 1, 1], [], []>} : vector<8x32xbf16>, vector<32x32xbf16>, vector<8x32xf32> -> vector<8x32xf32>
    %c0_14 = arith.constant 0 : index
    %c0_15 = arith.constant 0 : index
    %17 = vector.load %arg7[%c0_14, %c0_15] : memref<1x32xf32, #tpu.memory_space<vmem>>, vector<1x32xf32>
    %18 = vector.broadcast %17 : vector<1x32xf32> to vector<8x32xf32>
    %19 = arith.addf %16, %18 : vector<8x32xf32>
    %cst_16 = arith.constant 0.000000e+00 : f32
    %20 = vector.broadcast %cst_16 : f32 to vector<8x32xf32>
    %21 = arith.maximumf %19, %20 : vector<8x32xf32>
    %22 = arith.truncf %21 : vector<8x32xf32> to vector<8x32xbf16>
    %c0_17 = arith.constant 0 : index
    %c0_18 = arith.constant 0 : index
    %23 = vector.load %arg8[%c0_17, %c0_18] : memref<32x96xbf16, #tpu.memory_space<vmem>>, vector<32x96xbf16>
    %cst_19 = arith.constant dense<0.000000e+00> : vector<8x96xf32>
    %24 = tpu.matmul %22, %23, %cst_19 {dimension_numbers = #tpu.dot_dimension_numbers<[1], [0], [0], [1], [0, 0, 1, 1], [], []>} : vector<8x32xbf16>, vector<32x96xbf16>, vector<8x96xf32> -> vector<8x96xf32>
    %c0_20 = arith.constant 0 : index
    %c0_21 = arith.constant 0 : index
    %25 = vector.load %arg9[%c0_20, %c0_21] : memref<1x96xf32, #tpu.memory_space<vmem>>, vector<1x96xf32>
    %26 = vector.broadcast %25 : vector<1x96xf32> to vector<8x96xf32>
    %27 = arith.addf %24, %26 : vector<8x96xf32>
    %cst_22 = arith.constant 0.000000e+00 : f32
    %28 = vector.broadcast %cst_22 : f32 to vector<8x96xf32>
    %29 = arith.maximumf %27, %28 : vector<8x96xf32>
    %30 = arith.truncf %29 : vector<8x96xf32> to vector<8x96xbf16>
    %c0_23 = arith.constant 0 : index
    %c0_24 = arith.constant 0 : index
    %31 = vector.load %arg10[%c0_23, %c0_24] : memref<96x24xbf16, #tpu.memory_space<vmem>>, vector<96x24xbf16>
    %cst_25 = arith.constant dense<0.000000e+00> : vector<8x24xf32>
    %32 = tpu.matmul %30, %31, %cst_25 {dimension_numbers = #tpu.dot_dimension_numbers<[1], [0], [0], [1], [0, 0, 1, 1], [], []>} : vector<8x96xbf16>, vector<96x24xbf16>, vector<8x24xf32> -> vector<8x24xf32>
    %c0_26 = arith.constant 0 : index
    %c0_27 = arith.constant 0 : index
    %33 = vector.load %arg11[%c0_26, %c0_27] : memref<1x24xf32, #tpu.memory_space<vmem>>, vector<1x24xf32>
    %34 = vector.broadcast %33 : vector<1x24xf32> to vector<8x24xf32>
    %35 = arith.addf %32, %34 : vector<8x24xf32>
    %c0_28 = arith.constant 0 : index
    %c0_29 = arith.constant 0 : index
    %36 = vector.load %arg12[%c0_28, %c0_29] : memref<8x24xf32, #tpu.memory_space<vmem>>, vector<8x24xf32>
    tpu.vector_store %arg12[%c0_28, %c0_29], %35 {strides = array<i32>} : memref<8x24xf32, #tpu.memory_space<vmem>>, vector<8x24xf32>,
    return
  }
  func.func @transform_0(%arg0: i32) -> (i32, i32) {
    %c0_i32 = arith.constant 0 : i32
    %c0_i32_0 = arith.constant 0 : i32
    return %arg0, %c0_i32 : i32, i32
  }
  func.func @transform_1(%arg0: i32) -> (i32, i32) {
    %c0_i32 = arith.constant 0 : i32
    %c0_i32_0 = arith.constant 0 : i32
    return %arg0, %c0_i32 : i32, i32
  }
  func.func @transform_2(%arg0: i32) -> (i32, i32) {
    %c0_i32 = arith.constant 0 : i32
    %c0_i32_0 = arith.constant 0 : i32
    %c0_i32_1 = arith.constant 0 : i32
    return %c0_i32, %c0_i32_0 : i32, i32
  }
  func.func @transform_3(%arg0: i32) -> (i32, i32) {
    %c0_i32 = arith.constant 0 : i32
    %c0_i32_0 = arith.constant 0 : i32
    %c0_i32_1 = arith.constant 0 : i32
    return %c0_i32, %c0_i32_0 : i32, i32
  }
  func.func @transform_4(%arg0: i32) -> (i32, i32) {
    %c0_i32 = arith.constant 0 : i32
    %c0_i32_0 = arith.constant 0 : i32
    %c0_i32_1 = arith.constant 0 : i32
    return %c0_i32, %c0_i32_0 : i32, i32
  }
  func.func @transform_5(%arg0: i32) -> (i32, i32) {
    %c0_i32 = arith.constant 0 : i32
    %c0_i32_0 = arith.constant 0 : i32
    %c0_i32_1 = arith.constant 0 : i32
    return %c0_i32, %c0_i32_0 : i32, i32
  }
  func.func @transform_6(%arg0: i32) -> (i32, i32) {
    %c0_i32 = arith.constant 0 : i32
    %c0_i32_0 = arith.constant 0 : i32
    %c0_i32_1 = arith.constant 0 : i32
    return %c0_i32, %c0_i32_0 : i32, i32
  }
  func.func @transform_7(%arg0: i32) -> (i32, i32) {
    %c0_i32 = arith.constant 0 : i32
    %c0_i32_0 = arith.constant 0 : i32
    %c0_i32_1 = arith.constant 0 : i32
    return %c0_i32, %c0_i32_0 : i32, i32
  }
  func.func @transform_8(%arg0: i32) -> (i32, i32) {
    %c0_i32 = arith.constant 0 : i32
    %c0_i32_0 = arith.constant 0 : i32
    %c0_i32_1 = arith.constant 0 : i32
    return %c0_i32, %c0_i32_0 : i32, i32
  }
  func.func @transform_9(%arg0: i32) -> (i32, i32) {
    %c0_i32 = arith.constant 0 : i32
    %c0_i32_0 = arith.constant 0 : i32
    %c0_i32_1 = arith.constant 0 : i32
    return %c0_i32, %c0_i32_0 : i32, i32
  }
  func.func @transform_10(%arg0: i32) -> (i32, i32) {
    %c0_i32 = arith.constant 0 : i32
    %c0_i32_0 = arith.constant 0 : i32
    %c0_i32_1 = arith.constant 0 : i32
    return %c0_i32, %c0_i32_0 : i32, i32
  }
  func.func @transform_11(%arg0: i32) -> (i32, i32) {
    %c0_i32 = arith.constant 0 : i32
    %c0_i32_0 = arith.constant 0 : i32
    return %arg0, %c0_i32 : i32, i32
  }
}

</mosaic_0001>

<bundles_post_ra>
// kernel: tpu_custom_call.1
= control target key start
LH: loop header
LB: loop body
LE: loop exit
PB: predicated region body
PF: predicated region fallthrough
CT: control target
= control target key end

     0   :  { %vm51_vm0 = vcmask 1041408   ;;  %v524_v1 = vmov 0.0   ;;  %vm525_vm1 = vmmov 0   ;;  %vm47_vm2 = vcmask 31744   ;;  %s668_s0 = inlined_call_operand.vmem [shape: f32[8,16], index: 0, kind: input, shape index: {}]   ;;  %s669_s1 = inlined_call_operand.vmem [shape: f32[8,4], index: 1, kind: input, shape index: {}]   ;;  %s670_s2 = inlined_call_operand.vmem [shape: bf16[16,32], index: 2, kind: input, shape index: {}]   ;;  %s671_s3 = inlined_call_operand.vmem [shape: bf16[4,32], index: 3, kind: input, shape index: {}]   ;;  %s672_s4 = inlined_call_operand.vmem [shape: f32[1,32], index: 4, kind: input, shape index: {}]   ;;  %s673_s5 = inlined_call_operand.vmem [shape: bf16[32,32], index: 5, kind: input, shape index: {}]   ;;  %s674_s6 = inlined_call_operand.vmem [shape: f32[1,32], index: 6, kind: input, shape index: {}]   ;;  %s675_s7 = inlined_call_operand.vmem [shape: bf16[32,96], index: 7, kind: input, shape index: {}]   ;;  %s676_s8 = inlined_call_operand.vmem [shape: f32[1,96], index: 8, kind: input, shape index: {}]   ;;  %s677_s9 = inlined_call_operand.vmem [shape: bf16[96,24], index: 9, kind: input, shape index: {}]   ;;  %s678_s10 = inlined_call_operand.vmem [shape: f32[1,24], index: 10, kind: input, shape index: {}]   ;;  %s679_s11 = inlined_call_operand.hbm [shape: f32[8,24], index: 11, kind: output, shape index: {}]  }
   0x1   :  { %v46_v0 = vld [vmem:[%s671_s3] sm:$0x3]  ;;  %444 = vmatprep.subr.bf16.mxu0 %v524_v1  ;;  %450 = vmatprep.subr.bf16.mxu1 %v524_v1  ;;  %vm101_vm3 = vcmask 130048  }
   0x2   :  { %v53_v2 = vsel %vm51_vm0, %v46_v0, 0  ;;  %v491_v3 = vld [vmem:[%s670_s2] sm:$0xff]   ;;  %446 = vmatprep.mubr.msk.bf16.mxu0 %vm525_vm1, %v524_v1  ;;  %452 = vmatprep.mubr.msk.bf16.mxu1 %vm525_vm1, %v524_v1 }
   0x3   :  { %v42_v4 = vld [vmem:[%s669_s1] sm:$0xff]  ;;  %445 = vmatpush3.bf16.msra.mxu0 %v53_v2  ;;  %451 = vmatpush3.bf16.msra.mxu1 %v491_v3 }
   0x4   :  { %v43_v5 = vpack.c.bf16 %v42_v4, %v42_v4  ;;  %v40_v6 = vld [vmem:[%s668_s0] sm:$0xff]  ;;  %456 = vmatprep.subr.bf16.mxu1 %v524_v1  ;;  %472 = vmatprep.subr.bf16.mxu0 %v524_v1 }
   0x5   :  { %v41_v7 = vpack.c.bf16 %v40_v6, %v40_v6 }
   0x6   :  { %447 = vmatmul.mubr.msk.bf16.vlgmr.msra.gmra.mxu0 %vm47_vm2, %v43_v5 }
   0x7   :  { %453 = vmatmul.mubr.msk.bf16.vlgmr.msra.gmra.mxu1 %vm101_vm3, %v41_v7  ;;  %484 = vmatprep.mubr.msk.bf16.mxu0 %vm525_vm1, %v524_v1 }
   0x8   :  { %460 = vmatprep.mubr.msk.bf16.mxu1 %vm525_vm1, %v524_v1 }
   0x9   :  { %16 = vsyncpa [#allocation3], 0  ;;  %v492_v8 = vld [vmem:[%s673_s5 + $0x8] sm:$0xff]   ;;  %v493_v9 = vld [vmem:[%s673_s5] sm:$0xff]   ;;  %vm178_vm4 = vcmask 261120   ;;  %vm347_vm5 = vcmask 785408  }
   0xa   :  { %457 = vmatpush3.bf16.msra.mxu1 %v492_v8  ;;  %v410_v12 = vld [vmem:[%s672_s4] ss:$0 sm:$0xff]  ;;  %v494_v22 = vld [vmem:[%s675_s7 + $0x8] sm:$0xff]   ;;  %v498_v27 = vld [vmem:[%s677_s9 + $0x18] sm:$0xff]   ;;  %s526_s1 = smov [#allocation2]   ;;  %vm391_vm6 = vcmask 195584  }
   0xb   :  { %458 = vmatprep.subr.bf16.mxu1 %v524_v1  ;;  %v495_v24 = vld [vmem:[%s675_s7] sm:$0xff]   ;;  %v496_v25 = vld [vmem:[%s677_s9 + $0x28] sm:$0xff]   ;;  %v499_v28 = vld [vmem:[%s677_s9 + $0x10] sm:$0xff]  }
   0xc   :  { %473 = vmatpush3.bf16.msra.mxu0 %v496_v25  ;;  %v497_v26 = vld [vmem:[%s677_s9 + $0x20] sm:$0xff]   ;;  %v500_v37 = vld [vmem:[%s677_s9 + $0x8] sm:$0xff]  }
   0xd   :  { %474 = vmatprep.subr.bf16.mxu0 %v524_v1  ;;  %v411_v29 = vld [vmem:[%s674_s6] ss:$0 sm:$0xff] }
   0xe   :  { %459 = vmatpush3.bf16.msra.mxu1 %v493_v9  ;;  %v501_v38 = vld [vmem:[%s677_s9] sm:$0xff]   ;;  %s399_s9 = sshll.u32 %s526_s1, 4  ;;  %s400_s9 = int_to_ptr.vmem [resolvable:$true] %s399_s9 }
   0xf   :  { %464 = vmatprep.subr.bf16.mxu1 %v524_v1  ;;  %v415_v39 = vld [vmem:[%s676_s8] ss:$0 sm:$0xff]  ;;  %s502_s8 = scalar_lea.vmem %s400_s9, 128  ;;  %p507_p1 = scmp.lt.s32.totalorder %s400_s9, %s400_s9 }
  0x10   :  { %475 = vmatpush3.bf16.msra.mxu0 %v497_v26  ;;  %v419_v47 = vld [vmem:[%s678_s10] ss:$0 sm:$0xff]  ;;  %p503_p0 = scmp.ne.s32.totalorder %s400_s9, %s502_s8  ;;  %p508_p2 = scmp.lt.s32.totalorder %s502_s8, %s502_s8 }
  0x11   :  { %476 = vmatprep.subr.bf16.mxu0 %v524_v1 }
  0x12   :  { %p509_p3 = por %p508_p2, %p507_p1 }
  0x14   :  { %477 = vmatpush3.bf16.msra.mxu0 %v498_v27  ;;  %p510_p4 = pnand %p509_p3, %p503_p0 }
  0x15   :  { %478 = vmatprep.subr.bf16.mxu0 %v524_v1 }
  0x18   :  { %479 = vmatpush3.bf16.msra.mxu0 %v499_v28 }
  0x19   :  { %480 = vmatprep.subr.bf16.mxu0 %v524_v1 }
  0x1c   :  { %481 = vmatpush3.bf16.msra.mxu0 %v500_v37 }
  0x1d   :  { %482 = vmatprep.subr.bf16.mxu0 %v524_v1 }
  0x20   :  { %483 = vmatpush3.bf16.msra.mxu0 %v501_v38 }
  0xc6   :  { %v89_v10 = vpop.f32.mrf.mxu0 }
  0xc7   :  { %v139_v11 = vpop.f32.mrf.mxu1 }
  0xc8   :  { %v140_v13 = vadd.f32 %v139_v11, %v89_v10  ;;  %v448_v14 = vpop.f32.mrf.mxu0 }
  0xc9   :  { %v454_v15 = vpop.f32.mrf.mxu1 }
  0xca   :  { %v152_v16 = vadd.f32 %v410_v12, %v140_v13  ;;  %v92_v17 = vpop.f32.mrf.mxu0 }
  0xcb   :  { %v142_v18 = vpop.f32.mrf.mxu1 }
  0xcc   :  { %v153_v19 = vmax.f32 %v152_v16, 0.0  ;;  %v449_v20 = vpop.f32.mrf.mxu0 }
  0xcd   :  { %v455_v21 = vpop.f32.mrf.mxu1 }
  0xce   :  { %v154_v23 = vpack.c.bf16 %v153_v19, %v153_v19 }
  0xd0   :  { %461 = vmatmul.mubr.msk.bf16.vlgmr.msra.gmra.mxu1 %vm178_vm4, %v154_v23 }
  0xd1   :  { %465 = vmatpush3.bf16.msra.mxu1 %v494_v22  ;;  %468 = vmatprep.mubr.msk.bf16.mxu1 %vm525_vm1, %v524_v1 }
  0xd2   :  { %466 = vmatprep.subr.bf16.mxu1 %v524_v1 }
  0xd5   :  { %467 = vmatpush3.bf16.msra.mxu1 %v495_v24 }
 0x190   :  { %v216_v30 = vpop.f32.mrf.mxu1 }
 0x191   :  { %v217_v31 = vadd.f32 %v411_v29, %v216_v30 }
 0x192   :  { %v462_v32 = vpop.f32.mrf.mxu1 }
 0x193   :  { %v222_v33 = vmax.f32 %v217_v31, 0.0 }
 0x194   :  { %v219_v34 = vpop.f32.mrf.mxu1 }
 0x195   :  { %v223_v35 = vpack.c.bf16 %v222_v33, %v222_v33 }
 0x196   :  { %v463_v36 = vpop.f32.mrf.mxu1 }
 0x197   :  { %469 = vmatmul.mubr.msk.bf16.vlgmr.msra.gmra.mxu1 %vm178_vm4, %v223_v35 }
 0x257   :  { %v284_v40 = vpop.f32.mrf.mxu1 }
 0x258   :  { %v285_v41 = vadd.f32 %v415_v39, %v284_v40 }
 0x259   :  { %v470_v42 = vpop.f32.mrf.mxu1 }
 0x25a   :  { %v290_v43 = vmax.f32 %v285_v41, 0.0 }
 0x25b   :  { %v287_v44 = vpop.f32.mrf.mxu1 }
 0x25c   :  { %v291_v45 = vpack.c.bf16 %v290_v43, %v290_v43 }
 0x25d   :  { %v471_v46 = vpop.f32.mrf.mxu1 }
 0x25e   :  { %485 = vmatmul.mubr.msk.bf16.vlgmr.msra.gmra.mxu0 %vm347_vm5, %v291_v45 }
 0x31e   :  { %v385_v48 = vpop.f32.mrf.mxu0 }
 0x31f   :  { %v386_v49 = vadd.f32 %v419_v47, %v385_v48 }
 0x320   :  { %v486_v50 = vpop.f32.mrf.mxu0 }
 0x321   :  { %392 = vst.msk [vmem:[#allocation2] sm:$0xff] %vm391_vm6, %v386_v49 }
 0x322   :  { %v388_v51 = vpop.f32.mrf.mxu0 }
 0x323   :  { %513 = shalt.err (!%p510_p4)
}
 0x324   :  { %402 = dma.vmem_to_hbm [thread:$0]  %s400_s9, 128, %s679_s11, [#allocation3]   ;;  %v487_v52 = vpop.f32.mrf.mxu0 }
 0x325   :  { %522 = dma.done.wait [#allocation3], 128  }
 0x326   :  { %523 = vsyncadd [#allocation3], 4294967168 }
 0x327   :  { %406 = vsyncpa [#allocation3], 1 }

</bundles_post_ra>
